<compile_context>
chip_gen: v7x
topology: tpu7x:2x2x1
jax: 0.10.0
libtpu: 0.0.40
codegen_flags: <defaults>
</compile_context>

<pallas_src>
import functools

import jax
import jax.numpy as jnp
import numpy as np
from jax import lax
from jax.experimental import pallas as pl
from jax.experimental.pallas import tpu as pltpu


# ----------------------------------------------------------------------------
# Parameter construction (mirrors the nn.Module __init__/init()).
# ----------------------------------------------------------------------------
def build_1d_sincos_posemb(max_len: int, embed_dim: int, temperature: float = 10000.0):
    """1D sin-cos positional embedding, shape (max_len, embed_dim)."""
    assert embed_dim % 2 == 0
    arange = jnp.arange(max_len, dtype=jnp.float32)
    pos_dim = embed_dim // 2
    omega = jnp.arange(pos_dim, dtype=jnp.float32) / pos_dim
    omega = 1.0 / (temperature ** omega)
    out = jnp.einsum("n,d->nd", arange, omega)
    return jnp.concatenate([jnp.sin(out), jnp.cos(out)], axis=1)


def init_params(key, orig_emb_dim: int, dim_tokens: int, max_sincos_pos_emb: int,
                init_std: float = 0.02):
    k_w, k_b, k_mod = jax.random.split(key, 3)
    w = jax.random.normal(k_w, (orig_emb_dim, dim_tokens), jnp.float32) * init_std
    b = jax.random.normal(k_b, (1, dim_tokens), jnp.float32) * init_std
    mod = jax.random.normal(k_mod, (1, dim_tokens), jnp.float32) * init_std
    pos = build_1d_sincos_posemb(max_sincos_pos_emb, dim_tokens)
    return w, b, mod, pos


def _round_up(x: int, m: int) -> int:
    return ((x + m - 1) // m) * m


# ----------------------------------------------------------------------------
# Pallas kernel: one grid step processes a (TM, E) slab of flattened tokens.
# ----------------------------------------------------------------------------
def _seq_emb_kernel(emb_ref, posid_ref, w_ref, bmod_ref, poshl_ref,
                    x_ref, emb_out_ref, *, lp: int):
    # emb_ref:     (TM, E)    f32   flattened orig_emb rows (native dtype)
    # posid_ref:   (TM, 1)    i32   position ids, -1 for padded rows
    # w_ref:       (E, D)     bf16  linear weight (resident)
    # bmod_ref:    (2, D)     f32   row 0 = bias, row 1 = modality embedding
    # poshl_ref:   (2*LP, D)  bf16  [pos_hi ; pos_lo] split of the pos table
    # x_ref:       (TM, D)    out   projected tokens
    # emb_out_ref: (TM, D)    out   positional + modality embeddings

    # ---- linear projection on the MXU: in-kernel bf16 cast, f32 accumulate --
    a = emb_ref[...].astype(jnp.bfloat16)
    x = jnp.dot(a, w_ref[...], preferred_element_type=jnp.float32)
    x_ref[...] = (x + bmod_ref[0:1, :]).astype(x_ref.dtype)

    # ---- positional-row gather via a single bf16 one-hot matmul --------------
    # The one-hot spans the concatenated [hi ; lo] table, so the matmul yields
    # hi[pid] + lo[pid] ~= f32 pos_emb[pid].  pid < 0 (padding / ragged rows)
    # gives an all-zero one-hot row, i.e. a zero positional embedding.
    pid = posid_ref[...]                                            # (TM, 1) i32
    tm = pid.shape[0]
    iota = lax.broadcasted_iota(jnp.int32, (tm, 2 * lp), 1)
    hit = ((iota == pid) | (iota == pid + lp)) & (pid >= 0)
    onehot = hit.astype(jnp.bfloat16)                               # (TM, 2*LP)
    gathered = jnp.dot(onehot, poshl_ref[...],
                       preferred_element_type=jnp.float32)          # (TM, D)
    emb_out_ref[...] = (gathered + bmod_ref[1:2, :]).astype(emb_out_ref.dtype)


# ----------------------------------------------------------------------------
# Wrapper.
# ----------------------------------------------------------------------------
def sequence_emb_encoder_embedding(orig_emb, input_mask, w, b, mod_emb, pos_emb,
                                   *, tile_m: int = 512,
                                   out_dtype=jnp.float32,
                                   vmem_limit_bytes: int = 48 * 1024 * 1024,
                                   single_buffer_residents: bool = True):
    """Pallas implementation of SequenceEmbEncoderEmbedding.forward.

    Args:
      orig_emb:   (B, L, E) float32 (or bf16) original embeddings
      input_mask: (B, L) bool/int, 1 (True) for padding, 0 for valid tokens
      w:          (E, D) float32 linear weight
      b:          (1, D) float32 linear bias
      mod_emb:    (1, D) float32 modality embedding
      pos_emb:    (P, D) float32 sin-cos positional embedding table
      tile_m:     rows of flattened tokens per grid step (512-1024 is best for
                  large shapes; memory-bound roofline data)
      out_dtype:  output dtype (f32 matches the module; bf16 halves writeback)

    Returns:
      x:   (B, L, D) projected tokens
      emb: (B, L, D) positional + modality embeddings (zero pos-emb on padding)
    """
    B, L, E = orig_emb.shape
    P, D = pos_emb.shape
    if L > P:
        raise ValueError(f"sequence length {L} exceeds positional table size {P}")

    # --- cheap scalar prep in JAX: masked-cumsum position ids -----------------
    mask = input_mask.astype(bool)
    valid = (~mask).astype(jnp.int32)
    pos_id = jnp.cumsum(valid, axis=1) - 1
    pos_id = jnp.where(mask, -1, pos_id).astype(jnp.int32)          # (B, L)

    # --- flatten batch*seq; ragged last block handled by Pallas (no jnp.pad) --
    M = B * L
    tm = min(_round_up(tile_m, 8), _round_up(M, 8))
    grid_m = pl.cdiv(M, tm)

    emb2d = orig_emb.reshape(M, E)        # metadata-only reshape, native dtype
    posid2d = pos_id.reshape(M, 1)

    # --- resident parameters ---------------------------------------------------
    w_bf16 = w.astype(jnp.bfloat16)                                  # (E, D)
    bmod = jnp.concatenate([b.reshape(1, D), mod_emb.reshape(1, D)],
                           axis=0).astype(jnp.float32)               # (2, D)

    # Slice the positional table to the rows that can actually be hit and split
    # it into bf16 hi + bf16 residual (hi + lo reproduces ~f32 accuracy).
    lp = min(_round_up(L, 8), P)
    pos_f32 = pos_emb[:lp].astype(jnp.float32)
    pos_hi = pos_f32.astype(jnp.bfloat16)
    pos_lo = (pos_f32 - pos_hi.astype(jnp.float32)).astype(jnp.bfloat16)
    poshl = jnp.concatenate([pos_hi, pos_lo], axis=0)                # (2*lp, D)

    kernel = functools.partial(_seq_emb_kernel, lp=lp)

    def resident_spec(shape, single_buffer):
        zero_map = lambda i, _s=shape: (0,) * len(_s)
        if single_buffer:
            # Constant-index residents: single buffer saves VMEM (v7x: 64 MiB).
            return pl.BlockSpec(shape, zero_map, pipeline_mode=pl.Buffered(1))
        return pl.BlockSpec(shape, zero_map)

    def build_call(single_buffer):
        grid_spec = pltpu.PrefetchScalarGridSpec(
            num_scalar_prefetch=0,
            grid=(grid_m,),
            in_specs=[
                pl.BlockSpec((tm, E), lambda i: (i, 0)),     # orig_emb tile
                pl.BlockSpec((tm, 1), lambda i: (i, 0)),     # position ids
                resident_spec((E, D), single_buffer),        # weight (bf16)
                resident_spec((2, D), single_buffer),        # bias | mod (f32)
                resident_spec((2 * lp, D), single_buffer),   # pos hi|lo (bf16)
            ],
            out_specs=[
                pl.BlockSpec((tm, D), lambda i: (i, 0)),     # x
                pl.BlockSpec((tm, D), lambda i: (i, 0)),     # emb
            ],
        )
        return pl.pallas_call(
            kernel,
            out_shape=(jax.ShapeDtypeStruct((M, D), out_dtype),
                       jax.ShapeDtypeStruct((M, D), out_dtype)),
            grid_spec=grid_spec,
            compiler_params=pltpu.CompilerParams(
                dimension_semantics=("parallel",),
                vmem_limit_bytes=vmem_limit_bytes,
            ),
        )

    args = (emb2d, posid2d, w_bf16, bmod, poshl)
    if single_buffer_residents:
        try:
            x2d, e2d = build_call(True)(*args)
        except Exception:
            # Installed JAX may not accept pipeline_mode=pl.Buffered(1); fall
            # back to default (double-buffered) pipelining of the residents.
            x2d, e2d = build_call(False)(*args)
    else:
        x2d, e2d = build_call(False)(*args)

    return x2d.reshape(B, L, D), e2d.reshape(B, L, D)


# ----------------------------------------------------------------------------
# Pure-JAX reference (mirrors the PyTorch forward exactly, f32).
# ----------------------------------------------------------------------------
def reference(orig_emb, input_mask, w, b, mod_emb, pos_emb):
    mask = input_mask.astype(bool)
    x = jnp.einsum("ble,ed->bld", orig_emb, w) + b.reshape(-1)
    valid = (~mask).astype(jnp.int32)
    pos_id = jnp.cumsum(valid, axis=1) - 1
    pos_id = jnp.where(mask, 0, pos_id)
    gathered = jnp.take(pos_emb, pos_id, axis=0)                     # (B, L, D)
    gathered = jnp.where(mask[..., None], 0.0, gathered)
    emb = gathered + mod_emb.reshape(-1)[None, None, :]
    return x, emb


def _check(B, L, E, D, max_sincos, tile_m, key):
    k_params, k_x, k_len = jax.random.split(key, 3)
    w, b, mod_emb, pos_emb = init_params(k_params, E, D, max_sincos)

    orig_emb = jax.random.normal(k_x, (B, L, E), jnp.float32)
    lengths = jax.random.randint(k_len, (B,), max(1, L // 2), L + 1)
    input_mask = (jnp.arange(L)[None, :] >= lengths[:, None])        # (B, L) bool

    x, emb = sequence_emb_encoder_embedding(orig_emb, input_mask, w, b,
                                            mod_emb, pos_emb, tile_m=tile_m)
    jax.block_until_ready((x, emb))

    x_ref, emb_ref = reference(orig_emb, input_mask, w, b, mod_emb, pos_emb)
    # x goes through a bf16 MXU matmul -> loose tolerance vs. the f32 reference.
    np.testing.assert_allclose(np.asarray(x), np.asarray(x_ref),
                               rtol=1e-2, atol=1e-2)
    # emb path uses a bf16 hi+lo table split -> ~1e-5 absolute error.
    np.testing.assert_allclose(np.asarray(emb), np.asarray(emb_ref),
                               rtol=1e-4, atol=1e-4)


if __name__ == "__main__":
    key = jax.random.PRNGKey(0)
    k1, k2 = jax.random.split(key)

    # Small, module-consistent shapes (B, L, orig_emb_dim, dim_tokens).
    _check(B=2, L=8, E=32, D=32, max_sincos=64, tile_m=256, key=k1)
    # Exercises multi-step grid + ragged last block (M=120, tm=32 -> 4 steps,
    # last step has 24 valid rows).
    _check(B=3, L=40, E=48, D=64, max_sincos=64, tile_m=32, key=k2)

    print("KERNEL_OK")
</pallas_src>

<mosaic_0001>
module attributes {stable_mosaic.version = 11 : i64} {
  func.func @_seq_emb_kernel(%arg0: i32, %arg1: memref<16x32xf32, #tpu.memory_space<vmem>>, %arg2: memref<16x1xi32, #tpu.memory_space<vmem>>, %arg3: memref<32x32xbf16, #tpu.memory_space<vmem>>, %arg4: memref<2x32xf32, #tpu.memory_space<vmem>>, %arg5: memref<16x32xbf16, #tpu.memory_space<vmem>>, %arg6: memref<16x32xf32, #tpu.memory_space<vmem>>, %arg7: memref<16x32xf32, #tpu.memory_space<vmem>>) attributes {dimension_semantics = [#tpu.dimension_semantics<parallel>], iteration_bounds = array<i64: 1>, scalar_prefetch = 0 : i64, scratch_operands = 0 : i64, tpu.core_type = #tpu.core_type<tc>, window_params = [{transform_indices = @transform_0, window_bounds = array<i64: 16, 32>}, {transform_indices = @transform_1, window_bounds = array<i64: 16, 1>}, {pipeline_mode = #tpu.pipeline_mode<synchronous>, transform_indices = @transform_2, window_bounds = array<i64: 32, 32>}, {pipeline_mode = #tpu.pipeline_mode<synchronous>, transform_indices = @transform_3, window_bounds = array<i64: 2, 32>}, {pipeline_mode = #tpu.pipeline_mode<synchronous>, transform_indices = @transform_4, window_bounds = array<i64: 16, 32>}, {transform_indices = @transform_5, window_bounds = array<i64: 16, 32>}, {transform_indices = @transform_6, window_bounds = array<i64: 16, 32>}]} {
    %c0 = arith.constant 0 : index
    %c0_0 = arith.constant 0 : index
    %0 = vector.load %arg1[%c0, %c0_0] : memref<16x32xf32, #tpu.memory_space<vmem>>, vector<16x32xf32>
    %1 = arith.truncf %0 : vector<16x32xf32> to vector<16x32xbf16>
    %c0_1 = arith.constant 0 : index
    %c0_2 = arith.constant 0 : index
    %2 = vector.load %arg3[%c0_1, %c0_2] : memref<32x32xbf16, #tpu.memory_space<vmem>>, vector<32x32xbf16>
    %cst = arith.constant dense<0.000000e+00> : vector<16x32xf32>
    %3 = tpu.matmul %1, %2, %cst {dimension_numbers = #tpu.dot_dimension_numbers<[1], [0], [0], [1], [0, 0, 1, 1], [], []>} : vector<16x32xbf16>, vector<32x32xbf16>, vector<16x32xf32> -> vector<16x32xf32>
    %c0_3 = arith.constant 0 : index
    %c0_4 = arith.constant 0 : index
    %4 = vector.load %arg4[%c0_3, %c0_4] : memref<2x32xf32, #tpu.memory_space<vmem>>, vector<1x32xf32>
    %5 = vector.broadcast %4 : vector<1x32xf32> to vector<16x32xf32>
    %6 = arith.addf %3, %5 : vector<16x32xf32>
    %c0_5 = arith.constant 0 : index
    %c0_6 = arith.constant 0 : index
    %7 = vector.load %arg6[%c0_5, %c0_6] : memref<16x32xf32, #tpu.memory_space<vmem>>, vector<16x32xf32>
    tpu.vector_store %arg6[%c0_5, %c0_6], %6 {strides = array<i32>} : memref<16x32xf32, #tpu.memory_space<vmem>>, vector<16x32xf32>,
    %c0_7 = arith.constant 0 : index
    %c0_8 = arith.constant 0 : index
    %8 = vector.load %arg2[%c0_7, %c0_8] : memref<16x1xi32, #tpu.memory_space<vmem>>, vector<16x1xi32>
    %9 = tpu.iota {dimensions = array<i32: 1>} : vector<16x16xi32>
    %10 = vector.broadcast %8 : vector<16x1xi32> to vector<16x16xi32>
    %11 = arith.cmpi eq, %9, %10 : vector<16x16xi32>
    %c8_i32 = arith.constant 8 : i32
    %12 = vector.broadcast %c8_i32 : i32 to vector<16x1xi32>
    %13 = arith.addi %8, %12 : vector<16x1xi32>
    %14 = vector.broadcast %13 : vector<16x1xi32> to vector<16x16xi32>
    %15 = arith.cmpi eq, %9, %14 : vector<16x16xi32>
    %16 = arith.ori %11, %15 : vector<16x16xi1>
    %c0_i32 = arith.constant 0 : i32
    %17 = vector.broadcast %c0_i32 : i32 to vector<16x1xi32>
    %18 = arith.cmpi sge, %8, %17 : vector<16x1xi32>
    %19 = vector.broadcast %18 : vector<16x1xi1> to vector<16x16xi1>
    %20 = arith.andi %16, %19 : vector<16x16xi1>
    %21 = arith.extui %20 : vector<16x16xi1> to vector<16x16xi32>
    %22 = arith.sitofp %21 : vector<16x16xi32> to vector<16x16xf32>
    %23 = arith.truncf %22 : vector<16x16xf32> to vector<16x16xbf16>
    %c0_9 = arith.constant 0 : index
    %c0_10 = arith.constant 0 : index
    %24 = vector.load %arg5[%c0_9, %c0_10] : memref<16x32xbf16, #tpu.memory_space<vmem>>, vector<16x32xbf16>
    %cst_11 = arith.constant dense<0.000000e+00> : vector<16x32xf32>
    %25 = tpu.matmul %23, %24, %cst_11 {dimension_numbers = #tpu.dot_dimension_numbers<[1], [0], [0], [1], [0, 0, 1, 1], [], []>} : vector<16x16xbf16>, vector<16x32xbf16>, vector<16x32xf32> -> vector<16x32xf32>
    %c1 = arith.constant 1 : index
    %c0_12 = arith.constant 0 : index
    %26 = vector.load %arg4[%c1, %c0_12] : memref<2x32xf32, #tpu.memory_space<vmem>>, vector<1x32xf32>
    %27 = vector.broadcast %26 : vector<1x32xf32> to vector<16x32xf32>
    %28 = arith.addf %25, %27 : vector<16x32xf32>
    %c0_13 = arith.constant 0 : index
    %c0_14 = arith.constant 0 : index
    %29 = vector.load %arg7[%c0_13, %c0_14] : memref<16x32xf32, #tpu.memory_space<vmem>>, vector<16x32xf32>
    tpu.vector_store %arg7[%c0_13, %c0_14], %28 {strides = array<i32>} : memref<16x32xf32, #tpu.memory_space<vmem>>, vector<16x32xf32>,
    return
  }
  func.func @transform_0(%arg0: i32) -> (i32, i32) {
    %c0_i32 = arith.constant 0 : i32
    %c0_i32_0 = arith.constant 0 : i32
    return %arg0, %c0_i32 : i32, i32
  }
  func.func @transform_1(%arg0: i32) -> (i32, i32) {
    %c0_i32 = arith.constant 0 : i32
    %c0_i32_0 = arith.constant 0 : i32
    return %arg0, %c0_i32 : i32, i32
  }
  func.func @transform_2(%arg0: i32) -> (i32, i32) {
    %c0_i32 = arith.constant 0 : i32
    %c0_i32_0 = arith.constant 0 : i32
    %c0_i32_1 = arith.constant 0 : i32
    return %c0_i32, %c0_i32_0 : i32, i32
  }
  func.func @transform_3(%arg0: i32) -> (i32, i32) {
    %c0_i32 = arith.constant 0 : i32
    %c0_i32_0 = arith.constant 0 : i32
    %c0_i32_1 = arith.constant 0 : i32
    return %c0_i32, %c0_i32_0 : i32, i32
  }
  func.func @transform_4(%arg0: i32) -> (i32, i32) {
    %c0_i32 = arith.constant 0 : i32
    %c0_i32_0 = arith.constant 0 : i32
    %c0_i32_1 = arith.constant 0 : i32
    return %c0_i32, %c0_i32_0 : i32, i32
  }
  func.func @transform_5(%arg0: i32) -> (i32, i32) {
    %c0_i32 = arith.constant 0 : i32
    %c0_i32_0 = arith.constant 0 : i32
    return %arg0, %c0_i32 : i32, i32
  }
  func.func @transform_6(%arg0: i32) -> (i32, i32) {
    %c0_i32 = arith.constant 0 : i32
    %c0_i32_0 = arith.constant 0 : i32
    return %arg0, %c0_i32 : i32, i32
  }
}

module attributes {stable_mosaic.version = 11 : i64} {
  func.func @_seq_emb_kernel(%arg0: i32, %arg1: memref<16x32xf32, #tpu.memory_space<vmem>>, %arg2: memref<16x1xi32, #tpu.memory_space<vmem>>, %arg3: memref<32x32xbf16, #tpu.memory_space<vmem>>, %arg4: memref<2x32xf32, #tpu.memory_space<vmem>>, %arg5: memref<16x32xbf16, #tpu.memory_space<vmem>>, %arg6: memref<16x32xf32, #tpu.memory_space<vmem>>, %arg7: memref<16x32xf32, #tpu.memory_space<vmem>>) attributes {dimension_semantics = [#tpu.dimension_semantics<parallel>], iteration_bounds = array<i64: 1>, scalar_prefetch = 0 : i64, scratch_operands = 0 : i64, tpu.core_type = #tpu.core_type<tc>, window_params = [{transform_indices = @transform_0, window_bounds = array<i64: 16, 32>}, {transform_indices = @transform_1, window_bounds = array<i64: 16, 1>}, {pipeline_mode = #tpu.pipeline_mode<synchronous>, transform_indices = @transform_2, window_bounds = array<i64: 32, 32>}, {pipeline_mode = #tpu.pipeline_mode<synchronous>, transform_indices = @transform_3, window_bounds = array<i64: 2, 32>}, {pipeline_mode = #tpu.pipeline_mode<synchronous>, transform_indices = @transform_4, window_bounds = array<i64: 16, 32>}, {transform_indices = @transform_5, window_bounds = array<i64: 16, 32>}, {transform_indices = @transform_6, window_bounds = array<i64: 16, 32>}]} {
    %c0 = arith.constant 0 : index
    %c0_0 = arith.constant 0 : index
    %0 = vector.load %arg1[%c0, %c0_0] : memref<16x32xf32, #tpu.memory_space<vmem>>, vector<16x32xf32>
    %1 = arith.truncf %0 : vector<16x32xf32> to vector<16x32xbf16>
    %c0_1 = arith.constant 0 : index
    %c0_2 = arith.constant 0 : index
    %2 = vector.load %arg3[%c0_1, %c0_2] : memref<32x32xbf16, #tpu.memory_space<vmem>>, vector<32x32xbf16>
    %cst = arith.constant dense<0.000000e+00> : vector<16x32xf32>
    %3 = tpu.matmul %1, %2, %cst {dimension_numbers = #tpu.dot_dimension_numbers<[1], [0], [0], [1], [0, 0, 1, 1], [], []>} : vector<16x32xbf16>, vector<32x32xbf16>, vector<16x32xf32> -> vector<16x32xf32>
    %c0_3 = arith.constant 0 : index
    %c0_4 = arith.constant 0 : index
    %4 = vector.load %arg4[%c0_3, %c0_4] : memref<2x32xf32, #tpu.memory_space<vmem>>, vector<1x32xf32>
    %5 = vector.broadcast %4 : vector<1x32xf32> to vector<16x32xf32>
    %6 = arith.addf %3, %5 : vector<16x32xf32>
    %c0_5 = arith.constant 0 : index
    %c0_6 = arith.constant 0 : index
    %7 = vector.load %arg6[%c0_5, %c0_6] : memref<16x32xf32, #tpu.memory_space<vmem>>, vector<16x32xf32>
    tpu.vector_store %arg6[%c0_5, %c0_6], %6 {strides = array<i32>} : memref<16x32xf32, #tpu.memory_space<vmem>>, vector<16x32xf32>,
    %c0_7 = arith.constant 0 : index
    %c0_8 = arith.constant 0 : index
    %8 = vector.load %arg2[%c0_7, %c0_8] : memref<16x1xi32, #tpu.memory_space<vmem>>, vector<16x1xi32>
    %9 = tpu.iota {dimensions = array<i32: 1>} : vector<16x16xi32>
    %10 = vector.broadcast %8 : vector<16x1xi32> to vector<16x16xi32>
    %11 = arith.cmpi eq, %9, %10 : vector<16x16xi32>
    %c8_i32 = arith.constant 8 : i32
    %12 = vector.broadcast %c8_i32 : i32 to vector<16x1xi32>
    %13 = arith.addi %8, %12 : vector<16x1xi32>
    %14 = vector.broadcast %13 : vector<16x1xi32> to vector<16x16xi32>
    %15 = arith.cmpi eq, %9, %14 : vector<16x16xi32>
    %16 = arith.ori %11, %15 : vector<16x16xi1>
    %c0_i32 = arith.constant 0 : i32
    %17 = vector.broadcast %c0_i32 : i32 to vector<16x1xi32>
    %18 = arith.cmpi sge, %8, %17 : vector<16x1xi32>
    %19 = vector.broadcast %18 : vector<16x1xi1> to vector<16x16xi1>
    %20 = arith.andi %16, %19 : vector<16x16xi1>
    %21 = arith.extui %20 : vector<16x16xi1> to vector<16x16xi32>
    %22 = arith.sitofp %21 : vector<16x16xi32> to vector<16x16xf32>
    %23 = arith.truncf %22 : vector<16x16xf32> to vector<16x16xbf16>
    %c0_9 = arith.constant 0 : index
    %c0_10 = arith.constant 0 : index
    %24 = vector.load %arg5[%c0_9, %c0_10] : memref<16x32xbf16, #tpu.memory_space<vmem>>, vector<16x32xbf16>
    %cst_11 = arith.constant dense<0.000000e+00> : vector<16x32xf32>
    %25 = tpu.matmul %23, %24, %cst_11 {dimension_numbers = #tpu.dot_dimension_numbers<[1], [0], [0], [1], [0, 0, 1, 1], [], []>} : vector<16x16xbf16>, vector<16x32xbf16>, vector<16x32xf32> -> vector<16x32xf32>
    %c1 = arith.constant 1 : index
    %c0_12 = arith.constant 0 : index
    %26 = vector.load %arg4[%c1, %c0_12] : memref<2x32xf32, #tpu.memory_space<vmem>>, vector<1x32xf32>
    %27 = vector.broadcast %26 : vector<1x32xf32> to vector<16x32xf32>
    %28 = arith.addf %25, %27 : vector<16x32xf32>
    %c0_13 = arith.constant 0 : index
    %c0_14 = arith.constant 0 : index
    %29 = vector.load %arg7[%c0_13, %c0_14] : memref<16x32xf32, #tpu.memory_space<vmem>>, vector<16x32xf32>
    tpu.vector_store %arg7[%c0_13, %c0_14], %28 {strides = array<i32>} : memref<16x32xf32, #tpu.memory_space<vmem>>, vector<16x32xf32>,
    return
  }
  func.func @transform_0(%arg0: i32) -> (i32, i32) {
    %c0_i32 = arith.constant 0 : i32
    %c0_i32_0 = arith.constant 0 : i32
    return %arg0, %c0_i32 : i32, i32
  }
  func.func @transform_1(%arg0: i32) -> (i32, i32) {
    %c0_i32 = arith.constant 0 : i32
    %c0_i32_0 = arith.constant 0 : i32
    return %arg0, %c0_i32 : i32, i32
  }
  func.func @transform_2(%arg0: i32) -> (i32, i32) {
    %c0_i32 = arith.constant 0 : i32
    %c0_i32_0 = arith.constant 0 : i32
    %c0_i32_1 = arith.constant 0 : i32
    return %c0_i32, %c0_i32_0 : i32, i32
  }
  func.func @transform_3(%arg0: i32) -> (i32, i32) {
    %c0_i32 = arith.constant 0 : i32
    %c0_i32_0 = arith.constant 0 : i32
    %c0_i32_1 = arith.constant 0 : i32
    return %c0_i32, %c0_i32_0 : i32, i32
  }
  func.func @transform_4(%arg0: i32) -> (i32, i32) {
    %c0_i32 = arith.constant 0 : i32
    %c0_i32_0 = arith.constant 0 : i32
    %c0_i32_1 = arith.constant 0 : i32
    return %c0_i32, %c0_i32_0 : i32, i32
  }
  func.func @transform_5(%arg0: i32) -> (i32, i32) {
    %c0_i32 = arith.constant 0 : i32
    %c0_i32_0 = arith.constant 0 : i32
    return %arg0, %c0_i32 : i32, i32
  }
  func.func @transform_6(%arg0: i32) -> (i32, i32) {
    %c0_i32 = arith.constant 0 : i32
    %c0_i32_0 = arith.constant 0 : i32
    return %arg0, %c0_i32 : i32, i32
  }
}

</mosaic_0001>

<bundles_post_ra>
// kernel: tpu_custom_call.1
= control target key start
LH: loop header
LB: loop body
LE: loop exit
PB: predicated region body
PF: predicated region fallthrough
CT: control target
= control target key end

     0   :  { %12 = vsyncpa [#allocation3], 0  ;;  %s474_s0 = inlined_call_operand.vmem [shape: f32[16,32], index: 0, kind: input, shape index: {}]   ;;  %s475_s1 = inlined_call_operand.vmem [shape: s32[16,1], index: 1, kind: input, shape index: {}]   ;;  %s476_s2 = inlined_call_operand.hbm [shape: bf16[32,32], index: 2, kind: input, shape index: {}]   ;;  %s477_s3 = inlined_call_operand.vmem [shape: f32[2,32], index: 3, kind: input, shape index: {}]   ;;  %s478_s4 = inlined_call_operand.vmem [shape: bf16[16,32], index: 4, kind: input, shape index: {}]   ;;  %s479_s5 = inlined_call_operand.hbm [shape: f32[16,32], index: 5, kind: output, shape index: {0}]   ;;  %s480_s6 = inlined_call_operand.hbm [shape: f32[16,32], index: 6, kind: output, shape index: {1}]  }
   0x1   :  { %13 = vsyncpa [#allocation4], 0 }
   0x2   :  { %14 = vsyncpa [#allocation7], 0  ;;  %s361_s21 = smov [#allocation2]   ;;  %s289_s25 = scalar_lea.hbm %s476_s2, 256 }
   0x3   :  { %s24_s22 = sshll.u32 %s361_s21, 4  ;;  %p290_p0 = scmp.ne.s32.totalorder %s476_s2, %s289_s25  ;;  %s25_s22 = int_to_ptr.vmem [resolvable:$true] %s24_s22 }
   0x4   :  { %p293_p1 = scmp.lt.u32.totalorder %s289_s25, %s476_s2 }
   0x6   :  { %p295_p2 = pnand %p293_p1, %p290_p0 }
   0x8   :  { %298 = shalt.err (!%p295_p2)
}
   0x9   :  { %s299_s30 = scalar_lea.vmem %s25_s22, 256  ;;  %p304_p4 = scmp.lt.s32.totalorder %s25_s22, %s25_s22 }
   0xa   :  { %p300_p3 = scmp.ne.s32.totalorder %s25_s22, %s299_s30  ;;  %p305_p5 = scmp.lt.s32.totalorder %s299_s30, %s299_s30 }
   0xc   :  { %p306_p6 = por %p305_p5, %p304_p4 }
   0xe   :  { %p307_p7 = pnand %p306_p6, %p300_p3 }
  0x10   :  { %310 = shalt.err (!%p307_p7)
}
  0x11   :  { %s362_s7 = smov 64   ;;  %s363_s8 = smov 4  }
  0x12   :  { %30 = dma.hbm_to_vmem [thread:$0]  %s476_s2, 256, %s25_s22, [#allocation3], %s362_s7, %s362_s7, %s363_s8  }
  0x13   :  { %355 = dma.done.wait [#allocation3], 256  }
  0x14   :  { %356 = vsyncadd [#allocation3], 4294967040  ;;  %v364_v0 = vmov 0   ;;  %v110_v1 = vld [vmem:[%s475_s1] sm:$0xff]  ;;  %v111_v2 = vld [vmem:[%s475_s1 + $0x8] sm:$0xff]  ;;  %v365_v6 = vmov 0.0   ;;  %v112_v14 = vlaneseq }
  0x15   :  { %284 = vset.pattern.permute.xlu0 %v364_v0  ;;  %285 = vset.pattern.permute.xlu1 %v364_v0  ;;  %v122_v3 = vadd.s32 8, %v110_v1  ;;  %v123_v4 = vadd.s32 8, %v111_v2  ;;  %vm134_vm0 = vcmp.ge.s32.totalorder %v110_v1, 0  ;;  %v286_v5 = vld [vmem:[#allocation2] sm:$0xff]   ;;  %vm135_vm1 = vcmp.ge.s32.totalorder %v111_v2, 0  ;;  %v287_v9 = vld [vmem:[#allocation2 + $0x8] sm:$0xff]  }
  0x16   :  { %115 = vperm.xlu0 %284, %v110_v1   ;;  %260 = vmatprep.subr.bf16.mxu0 %v365_v6  ;;  %v136_v7 = vsel %vm134_vm0, 1, %v364_v0  ;;  %v137_v8 = vsel %vm135_vm1, 1, %v364_v0  ;;  %v39_v10 = vld [vmem:[%s474_s0] sm:$0xff]  ;;  %v40_v11 = vld [vmem:[%s474_s0 + $0x8] sm:$0xff]  ;;  %vm366_vm2 = vmmov 0   ;;  %vm63_vm3 = vcmask 261120  }
  0x17   :  { %125 = vperm.xlu1 %285, %v122_v3   ;;  %261 = vmatpush3.bf16.msra.mxu0 %v286_v5  ;;  %v41_v12 = vpack.c.bf16 %v40_v11, %v39_v10  ;;  %v288_v13 = vld [vmem:[%s478_s4] sm:$0xff]   ;;  %v113_v16 = vand.u32 127, %v112_v14  ;;  %vm166_vm14 = vcmask 130048   ;;  %s367_s19 = smov [#allocation5]  }
  0x18   :  { %268 = vmatprep.subr.bf16.mxu1 %v365_v6  ;;  %262 = vmatprep.subr.bf16.mxu0 %v365_v6  ;;  %v246_v25 = vld [vmem:[%s477_s3] ss:$0 sm:$0xff]  ;;  %s218_s20 = sshll.u32 %s367_s19, 4  ;;  %s219_s20 = int_to_ptr.vmem [resolvable:$true] %s218_s20 }
  0x19   :  { %264 = vmatprep.mubr.msk.bf16.mxu0 %vm366_vm2, %v365_v6  ;;  %270 = vmatprep.mubr.msk.bf16.mxu1 %vm366_vm2, %v365_v6  ;;  %s311_s21 = scalar_lea.vmem %s219_s20, 256  ;;  %p316_p9 = scmp.lt.s32.totalorder %s219_s20, %s219_s20 }
  0x1a   :  { %118 = vperm.xlu0 %284, %v111_v2   ;;  %269 = vmatpush3.bf16.msra.mxu1 %v288_v13  ;;  %p312_p8 = scmp.ne.s32.totalorder %s219_s20, %s311_s21  ;;  %p317_p10 = scmp.lt.s32.totalorder %s311_s21, %s311_s21 }
  0x1b   :  { %128 = vperm.xlu1 %285, %v123_v4   ;;  %263 = vmatpush3.bf16.msra.mxu0 %v287_v9 }
  0x1c   :  { %p318_p11 = por %p317_p10, %p316_p9 }
  0x1e   :  { %139 = vperm.xlu0 %284, %v136_v7   ;;  %265 = vmatmul.mubr.msk.bf16.vlgmr.msra.gmra.mrb[0].mxu0 %vm63_vm3, %v41_v12  ;;  %p319_p12 = pnand %p318_p11, %p312_p8 }
  0x1f   :  { %142 = vperm.xlu1 %285, %v137_v8  }
  0x95   :  { %v116_v15 = vpop.permute.xlu0 %115 }
  0x96   :  { %v126_v17 = vpop.permute.xlu1 %125  ;;  %vm120_vm4 = vcmp.eq.s32.totalorder %v113_v16, %v116_v15 }
  0x97   :  { %vm130_vm5 = vcmp.eq.s32.totalorder %v113_v16, %v126_v17 }
  0x98   :  { %vm132_vm7 = vmor %vm120_vm4, %vm130_vm5 }
  0x99   :  { %v119_v18 = vpop.permute.xlu0 %118 }
  0x9a   :  { %v129_v19 = vpop.permute.xlu1 %128  ;;  %vm121_vm9 = vcmp.eq.s32.totalorder %v113_v16, %v119_v18 }
  0x9b   :  { %vm131_vm6 = vcmp.eq.s32.totalorder %v113_v16, %v129_v19 }
  0x9c   :  { %vm133_vm11 = vmor %vm121_vm9, %vm131_vm6 }
  0x9d   :  { %v140_v20 = vpop.permute.xlu0 %139 }
  0x9e   :  { %vm144_vm8 = vcmp.eq.s32.totalorder %v140_v20, 1  ;;  %v143_v21 = vpop.permute.xlu1 %142 }
  0x9f   :  { %vm146_vm10 = vmand %vm132_vm7, %vm144_vm8  ;;  %vm145_vm12 = vcmp.eq.s32.totalorder %v143_v21, 1 }
  0xa0   :  { %vm147_vm13 = vmand %vm133_vm11, %vm145_vm12  ;;  %v250_v22 = vsel %vm146_vm10, 1.0, %v365_v6 }
  0xa1   :  { %v251_v23 = vsel %vm147_vm13, 1.0, %v365_v6 }
  0xa2   :  { %v152_v24 = vpack.c.bf16 %v251_v23, %v250_v22 }
  0xa4   :  { %271 = vmatmul.mubr.msk.bf16.vlgmr.msra.gmra.mrb[0].mxu1 %vm166_vm14, %v152_v24 }
  0xf1   :  { %v101_v26 = vpop.f32.mrb[0].mxu0 }
  0xf2   :  { %v102_v27 = vadd.f32 %v246_v25, %v101_v26  ;;  %v266_v28 = vpop.f32.mrb[1].mxu0 }
  0xf3   :  { %v104_v29 = vpop.f32.mrb[2].mxu0 }
  0xf4   :  { %108 = vst.msk [vmem:[#allocation5] sm:$0xff] %vm63_vm3, %v102_v27  ;;  %v105_v30 = vadd.f32 %v246_v25, %v104_v29  ;;  %v267_v31 = vpop.f32.mrb[3].mxu0 }
  0xf6   :  { %109 = vst.msk [vmem:[#allocation5 + $0x8] sm:$0xff] %vm63_vm3, %v105_v30 }
  0xf7   :  { %322 = shalt.err (!%p319_p12)
}
  0xf8   :  { %s323_s24 = scalar_lea.hbm %s479_s5, 256 }
  0xf9   :  { %p324_p13 = scmp.ne.s32.totalorder %s479_s5, %s323_s24  ;;  %p327_p0 = scmp.lt.u32.totalorder %s323_s24, %s479_s5 }
  0xfb   :  { %p329_p1 = pnand %p327_p0, %p324_p13 }
  0xfd   :  { %332 = shalt.err (!%p329_p1)
}
  0xfe   :  { %s368_s29 = smov 128   ;;  %s369_s30 = smov 8   ;;  %v252_v32 = vld [vmem:[%s477_s3 + $0x1] ss:$0 sm:$0xff] }
  0xff   :  { %224 = dma.vmem_to_hbm [thread:$0]  %s219_s20, 256, %s479_s5, [#allocation4], %s368_s29, %s368_s29, %s369_s30  }
 0x100   :  { %s370_s11 = smov [#allocation6]  }
 0x101   :  { %s230_s12 = sshll.u32 %s370_s11, 4  ;;  %s231_s12 = int_to_ptr.vmem [resolvable:$true] %s230_s12 }
 0x102   :  { %s333_s13 = scalar_lea.vmem %s231_s12, 256  ;;  %p338_p3 = scmp.lt.s32.totalorder %s231_s12, %s231_s12 }
 0x103   :  { %p334_p2 = scmp.ne.s32.totalorder %s231_s12, %s333_s13  ;;  %p339_p4 = scmp.lt.s32.totalorder %s333_s13, %s333_s13 }
 0x105   :  { %p340_p5 = por %p339_p4, %p338_p3 }
 0x107   :  { %p341_p6 = pnand %p340_p5, %p334_p2 }
 0x177   :  { %v204_v33 = vpop.f32.mrb[0].mxu1 }
 0x178   :  { %v205_v34 = vadd.f32 %v252_v32, %v204_v33  ;;  %v272_v35 = vpop.f32.mrb[1].mxu1 }
 0x179   :  { %v207_v36 = vpop.f32.mrb[2].mxu1 }
 0x17a   :  { %211 = vst.msk [vmem:[#allocation6] sm:$0xff] %vm63_vm3, %v205_v34  ;;  %v208_v37 = vadd.f32 %v252_v32, %v207_v36  ;;  %v273_v38 = vpop.f32.mrb[3].mxu1 }
 0x17c   :  { %212 = vst.msk [vmem:[#allocation6 + $0x8] sm:$0xff] %vm63_vm3, %v208_v37 }
 0x17d   :  { %344 = shalt.err (!%p341_p6)
}
 0x17e   :  { %s345_s14 = scalar_lea.hbm %s480_s6, 256 }
 0x17f   :  { %p346_p7 = scmp.ne.s32.totalorder %s480_s6, %s345_s14  ;;  %p349_p8 = scmp.lt.u32.totalorder %s345_s14, %s480_s6 }
 0x181   :  { %p351_p9 = pnand %p349_p8, %p346_p7 }
 0x183   :  { %354 = shalt.err (!%p351_p9)
}
 0x184   :  { %236 = dma.vmem_to_hbm [thread:$0]  %s231_s12, 256, %s480_s6, [#allocation7], %s368_s29, %s368_s29, %s369_s30  }
 0x185   :  { %357 = dma.done.wait [#allocation4], 256  }
 0x186   :  { %358 = vsyncadd [#allocation4], 4294967040 }
 0x187   :  { %359 = dma.done.wait [#allocation7], 256  }
 0x188   :  { %360 = vsyncadd [#allocation7], 4294967040 }
 0x189   :  { %243 = vsyncpa [#allocation3], 1 }
 0x18a   :  { %244 = vsyncpa [#allocation4], 1 }
 0x18b   :  { %245 = vsyncpa [#allocation7], 1 }

// kernel: tpu_custom_call.1
= control target key start
LH: loop header
LB: loop body
LE: loop exit
PB: predicated region body
PF: predicated region fallthrough
CT: control target
= control target key end

     0   :  { %12 = vsyncpa [#allocation3], 0  ;;  %s474_s0 = inlined_call_operand.vmem [shape: f32[16,32], index: 0, kind: input, shape index: {}]   ;;  %s475_s1 = inlined_call_operand.vmem [shape: s32[16,1], index: 1, kind: input, shape index: {}]   ;;  %s476_s2 = inlined_call_operand.hbm [shape: bf16[32,32], index: 2, kind: input, shape index: {}]   ;;  %s477_s3 = inlined_call_operand.vmem [shape: f32[2,32], index: 3, kind: input, shape index: {}]   ;;  %s478_s4 = inlined_call_operand.vmem [shape: bf16[16,32], index: 4, kind: input, shape index: {}]   ;;  %s479_s5 = inlined_call_operand.hbm [shape: f32[16,32], index: 5, kind: output, shape index: {0}]   ;;  %s480_s6 = inlined_call_operand.hbm [shape: f32[16,32], index: 6, kind: output, shape index: {1}]  }
   0x1   :  { %13 = vsyncpa [#allocation4], 0 }
   0x2   :  { %14 = vsyncpa [#allocation7], 0  ;;  %s361_s21 = smov [#allocation2]   ;;  %s289_s25 = scalar_lea.hbm %s476_s2, 256 }
   0x3   :  { %s24_s22 = sshll.u32 %s361_s21, 4  ;;  %p290_p0 = scmp.ne.s32.totalorder %s476_s2, %s289_s25  ;;  %s25_s22 = int_to_ptr.vmem [resolvable:$true] %s24_s22 }
   0x4   :  { %p293_p1 = scmp.lt.u32.totalorder %s289_s25, %s476_s2 }
   0x6   :  { %p295_p2 = pnand %p293_p1, %p290_p0 }
   0x8   :  { %298 = shalt.err (!%p295_p2)
}
   0x9   :  { %s299_s30 = scalar_lea.vmem %s25_s22, 256  ;;  %p304_p4 = scmp.lt.s32.totalorder %s25_s22, %s25_s22 }
   0xa   :  { %p300_p3 = scmp.ne.s32.totalorder %s25_s22, %s299_s30  ;;  %p305_p5 = scmp.lt.s32.totalorder %s299_s30, %s299_s30 }
   0xc   :  { %p306_p6 = por %p305_p5, %p304_p4 }
   0xe   :  { %p307_p7 = pnand %p306_p6, %p300_p3 }
  0x10   :  { %310 = shalt.err (!%p307_p7)
}
  0x11   :  { %s362_s7 = smov 64   ;;  %s363_s8 = smov 4  }
  0x12   :  { %30 = dma.hbm_to_vmem [thread:$0]  %s476_s2, 256, %s25_s22, [#allocation3], %s362_s7, %s362_s7, %s363_s8  }
  0x13   :  { %355 = dma.done.wait [#allocation3], 256  }
  0x14   :  { %356 = vsyncadd [#allocation3], 4294967040  ;;  %v364_v0 = vmov 0   ;;  %v110_v1 = vld [vmem:[%s475_s1] sm:$0xff]  ;;  %v111_v2 = vld [vmem:[%s475_s1 + $0x8] sm:$0xff]  ;;  %v365_v6 = vmov 0.0   ;;  %v112_v14 = vlaneseq }
  0x15   :  { %284 = vset.pattern.permute.xlu0 %v364_v0  ;;  %285 = vset.pattern.permute.xlu1 %v364_v0  ;;  %v122_v3 = vadd.s32 8, %v110_v1  ;;  %v123_v4 = vadd.s32 8, %v111_v2  ;;  %vm134_vm0 = vcmp.ge.s32.totalorder %v110_v1, 0  ;;  %v286_v5 = vld [vmem:[#allocation2] sm:$0xff]   ;;  %vm135_vm1 = vcmp.ge.s32.totalorder %v111_v2, 0  ;;  %v287_v9 = vld [vmem:[#allocation2 + $0x8] sm:$0xff]  }
  0x16   :  { %115 = vperm.xlu0 %284, %v110_v1   ;;  %260 = vmatprep.subr.bf16.mxu0 %v365_v6  ;;  %v136_v7 = vsel %vm134_vm0, 1, %v364_v0  ;;  %v137_v8 = vsel %vm135_vm1, 1, %v364_v0  ;;  %v39_v10 = vld [vmem:[%s474_s0] sm:$0xff]  ;;  %v40_v11 = vld [vmem:[%s474_s0 + $0x8] sm:$0xff]  ;;  %vm366_vm2 = vmmov 0   ;;  %vm63_vm3 = vcmask 261120  }
  0x17   :  { %125 = vperm.xlu1 %285, %v122_v3   ;;  %261 = vmatpush3.bf16.msra.mxu0 %v286_v5  ;;  %v41_v12 = vpack.c.bf16 %v40_v11, %v39_v10  ;;  %v288_v13 = vld [vmem:[%s478_s4] sm:$0xff]   ;;  %v113_v16 = vand.u32 127, %v112_v14  ;;  %vm166_vm14 = vcmask 130048   ;;  %s367_s19 = smov [#allocation5]  }
  0x18   :  { %268 = vmatprep.subr.bf16.mxu1 %v365_v6  ;;  %262 = vmatprep.subr.bf16.mxu0 %v365_v6  ;;  %v246_v25 = vld [vmem:[%s477_s3] ss:$0 sm:$0xff]  ;;  %s218_s20 = sshll.u32 %s367_s19, 4  ;;  %s219_s20 = int_to_ptr.vmem [resolvable:$true] %s218_s20 }
  0x19   :  { %264 = vmatprep.mubr.msk.bf16.mxu0 %vm366_vm2, %v365_v6  ;;  %270 = vmatprep.mubr.msk.bf16.mxu1 %vm366_vm2, %v365_v6  ;;  %s311_s21 = scalar_lea.vmem %s219_s20, 256  ;;  %p316_p9 = scmp.lt.s32.totalorder %s219_s20, %s219_s20 }
  0x1a   :  { %118 = vperm.xlu0 %284, %v111_v2   ;;  %269 = vmatpush3.bf16.msra.mxu1 %v288_v13  ;;  %p312_p8 = scmp.ne.s32.totalorder %s219_s20, %s311_s21  ;;  %p317_p10 = scmp.lt.s32.totalorder %s311_s21, %s311_s21 }
  0x1b   :  { %128 = vperm.xlu1 %285, %v123_v4   ;;  %263 = vmatpush3.bf16.msra.mxu0 %v287_v9 }
  0x1c   :  { %p318_p11 = por %p317_p10, %p316_p9 }
  0x1e   :  { %139 = vperm.xlu0 %284, %v136_v7   ;;  %265 = vmatmul.mubr.msk.bf16.vlgmr.msra.gmra.mrb[0].mxu0 %vm63_vm3, %v41_v12  ;;  %p319_p12 = pnand %p318_p11, %p312_p8 }
  0x1f   :  { %142 = vperm.xlu1 %285, %v137_v8  }
  0x95   :  { %v116_v15 = vpop.permute.xlu0 %115 }
  0x96   :  { %v126_v17 = vpop.permute.xlu1 %125  ;;  %vm120_vm4 = vcmp.eq.s32.totalorder %v113_v16, %v116_v15 }
  0x97   :  { %vm130_vm5 = vcmp.eq.s32.totalorder %v113_v16, %v126_v17 }
  0x98   :  { %vm132_vm7 = vmor %vm120_vm4, %vm130_vm5 }
  0x99   :  { %v119_v18 = vpop.permute.xlu0 %118 }
  0x9a   :  { %v129_v19 = vpop.permute.xlu1 %128  ;;  %vm121_vm9 = vcmp.eq.s32.totalorder %v113_v16, %v119_v18 }
  0x9b   :  { %vm131_vm6 = vcmp.eq.s32.totalorder %v113_v16, %v129_v19 }
  0x9c   :  { %vm133_vm11 = vmor %vm121_vm9, %vm131_vm6 }
  0x9d   :  { %v140_v20 = vpop.permute.xlu0 %139 }
  0x9e   :  { %vm144_vm8 = vcmp.eq.s32.totalorder %v140_v20, 1  ;;  %v143_v21 = vpop.permute.xlu1 %142 }
  0x9f   :  { %vm146_vm10 = vmand %vm132_vm7, %vm144_vm8  ;;  %vm145_vm12 = vcmp.eq.s32.totalorder %v143_v21, 1 }
  0xa0   :  { %vm147_vm13 = vmand %vm133_vm11, %vm145_vm12  ;;  %v250_v22 = vsel %vm146_vm10, 1.0, %v365_v6 }
  0xa1   :  { %v251_v23 = vsel %vm147_vm13, 1.0, %v365_v6 }
  0xa2   :  { %v152_v24 = vpack.c.bf16 %v251_v23, %v250_v22 }
  0xa4   :  { %271 = vmatmul.mubr.msk.bf16.vlgmr.msra.gmra.mrb[0].mxu1 %vm166_vm14, %v152_v24 }
  0xf1   :  { %v101_v26 = vpop.f32.mrb[0].mxu0 }
  0xf2   :  { %v102_v27 = vadd.f32 %v246_v25, %v101_v26  ;;  %v266_v28 = vpop.f32.mrb[1].mxu0 }
  0xf3   :  { %v104_v29 = vpop.f32.mrb[2].mxu0 }
  0xf4   :  { %108 = vst.msk [vmem:[#allocation5] sm:$0xff] %vm63_vm3, %v102_v27  ;;  %v105_v30 = vadd.f32 %v246_v25, %v104_v29  ;;  %v267_v31 = vpop.f32.mrb[3].mxu0 }
  0xf6   :  { %109 = vst.msk [vmem:[#allocation5 + $0x8] sm:$0xff] %vm63_vm3, %v105_v30 }
  0xf7   :  { %322 = shalt.err (!%p319_p12)
}
  0xf8   :  { %s323_s24 = scalar_lea.hbm %s479_s5, 256 }
  0xf9   :  { %p324_p13 = scmp.ne.s32.totalorder %s479_s5, %s323_s24  ;;  %p327_p0 = scmp.lt.u32.totalorder %s323_s24, %s479_s5 }
  0xfb   :  { %p329_p1 = pnand %p327_p0, %p324_p13 }
  0xfd   :  { %332 = shalt.err (!%p329_p1)
}
  0xfe   :  { %s368_s29 = smov 128   ;;  %s369_s30 = smov 8   ;;  %v252_v32 = vld [vmem:[%s477_s3 + $0x1] ss:$0 sm:$0xff] }
  0xff   :  { %224 = dma.vmem_to_hbm [thread:$0]  %s219_s20, 256, %s479_s5, [#allocation4], %s368_s29, %s368_s29, %s369_s30  }
 0x100   :  { %s370_s11 = smov [#allocation6]  }
 0x101   :  { %s230_s12 = sshll.u32 %s370_s11, 4  ;;  %s231_s12 = int_to_ptr.vmem [resolvable:$true] %s230_s12 }
 0x102   :  { %s333_s13 = scalar_lea.vmem %s231_s12, 256  ;;  %p338_p3 = scmp.lt.s32.totalorder %s231_s12, %s231_s12 }
 0x103   :  { %p334_p2 = scmp.ne.s32.totalorder %s231_s12, %s333_s13  ;;  %p339_p4 = scmp.lt.s32.totalorder %s333_s13, %s333_s13 }
 0x105   :  { %p340_p5 = por %p339_p4, %p338_p3 }
 0x107   :  { %p341_p6 = pnand %p340_p5, %p334_p2 }
 0x177   :  { %v204_v33 = vpop.f32.mrb[0].mxu1 }
 0x178   :  { %v205_v34 = vadd.f32 %v252_v32, %v204_v33  ;;  %v272_v35 = vpop.f32.mrb[1].mxu1 }
 0x179   :  { %v207_v36 = vpop.f32.mrb[2].mxu1 }
 0x17a   :  { %211 = vst.msk [vmem:[#allocation6] sm:$0xff] %vm63_vm3, %v205_v34  ;;  %v208_v37 = vadd.f32 %v252_v32, %v207_v36  ;;  %v273_v38 = vpop.f32.mrb[3].mxu1 }
 0x17c   :  { %212 = vst.msk [vmem:[#allocation6 + $0x8] sm:$0xff] %vm63_vm3, %v208_v37 }
 0x17d   :  { %344 = shalt.err (!%p341_p6)
}
 0x17e   :  { %s345_s14 = scalar_lea.hbm %s480_s6, 256 }
 0x17f   :  { %p346_p7 = scmp.ne.s32.totalorder %s480_s6, %s345_s14  ;;  %p349_p8 = scmp.lt.u32.totalorder %s345_s14, %s480_s6 }
 0x181   :  { %p351_p9 = pnand %p349_p8, %p346_p7 }
 0x183   :  { %354 = shalt.err (!%p351_p9)
}
 0x184   :  { %236 = dma.vmem_to_hbm [thread:$0]  %s231_s12, 256, %s480_s6, [#allocation7], %s368_s29, %s368_s29, %s369_s30  }
 0x185   :  { %357 = dma.done.wait [#allocation4], 256  }
 0x186   :  { %358 = vsyncadd [#allocation4], 4294967040 }
 0x187   :  { %359 = dma.done.wait [#allocation7], 256  }
 0x188   :  { %360 = vsyncadd [#allocation7], 4294967040 }
 0x189   :  { %243 = vsyncpa [#allocation3], 1 }
 0x18a   :  { %244 = vsyncpa [#allocation4], 1 }
 0x18b   :  { %245 = vsyncpa [#allocation7], 1 }

</bundles_post_ra>
